<compile_context>
chip_gen: v7x
topology: tpu7x:2x2x1
jax: 0.10.0
libtpu: 0.0.40
codegen_flags: <defaults>
</compile_context>

<pallas_src>
import functools

import numpy as np
import jax
import jax.numpy as jnp
from jax import lax
from jax.experimental import pallas as pl
from jax.experimental.pallas import tpu as pltpu


def _spec_kernel(chunks_ref, wt_ref, out_ref, *, tm, R, f_pad, power):
    """One (batch-row, frame-tile) grid step.

    chunks_ref : (1, C_pad, chunk_len) f32  hop-sized waveform chunks (row resident)
    wt_ref     : (R, 2*f_pad, chunk_len) f32 window-folded [cos ; -sin] DFT slabs
    out_ref    : (1, f_pad, tm) f32          |X|^power, already (freq, frames)
    """
    j = pl.program_id(1)
    base = pl.multiple_of(j * tm, 128)          # chunk index of first frame in tile

    acc = jnp.zeros((2 * f_pad, tm), jnp.float32)
    for r in range(R):                          # static unroll, R = n_fft // hop
        # frames [base, base+tm), samples [r*hop, (r+1)*hop)  ->  (tm, chunk_len)
        part = chunks_ref[0, pl.ds(base + r, tm), :]
        wtr = wt_ref[r]                         # (2*f_pad, chunk_len)
        # einsum 'fk,mk->fm': result lands directly in (freq, frames) orientation.
        acc = acc + lax.dot_general(
            wtr, part, (((1,), (1,)), ((), ())),
            preferred_element_type=jnp.float32)

    re = acc[:f_pad, :]
    im = acc[f_pad:, :]
    pwr = re * re + im * im                     # |X|^2
    if power == 1.0:
        pwr = jnp.sqrt(pwr)
    elif power != 2.0:
        pwr = jnp.power(pwr, 0.5 * power)
    out_ref[0, :, :] = pwr


def spectrogram_pallas(waveform, *, n_fft=400, win_length=None, hop_length=None,
                       pad=0, power=2.0, normalized=False, center=True,
                       pad_mode="reflect", onesided=True):
    """JAX/Pallas equivalent of torchaudio Spectrogram.forward (real power spec)."""
    if win_length is None:
        win_length = n_fft
    if hop_length is None:
        hop_length = win_length // 2
    # TODO(synk): power=None / return_complex=True (complex output) not supported.
    assert power is not None, "complex output not supported in this kernel"
    assert onesided, "only onesided=True implemented"  # TODO(synk): onesided=False
    assert win_length <= n_fft

    waveform = jnp.asarray(waveform, jnp.float32)
    if pad > 0:
        waveform = jnp.pad(
            waveform, [(0, 0)] * (waveform.ndim - 1) + [(pad, pad)])

    batch_shape = waveform.shape[:-1]
    T = waveform.shape[-1]
    wf = waveform.reshape(-1, T)                       # (Bf, T)
    Bf = wf.shape[0]

    if center:
        pc = n_fft // 2
        mode = {"reflect": "reflect", "constant": "constant",
                "replicate": "edge", "circular": "wrap"}.get(pad_mode, pad_mode)
        wf = jnp.pad(wf, ((0, 0), (pc, pc)), mode=mode)
    Tp = wf.shape[-1]
    n_frames = 1 + (Tp - n_fft) // hop_length
    n_freq = n_fft // 2 + 1
    f_pad = 8 * pl.cdiv(n_freq, 8)                     # sublane-aligned freq rows

    # Periodic Hann window (torch.hann_window default), centered to n_fft like
    # torch.stft, with torchaudio's `normalized` scale folded in.
    n = np.arange(win_length, dtype=np.float64)
    win = 0.5 - 0.5 * np.cos(2.0 * np.pi * n / win_length)
    full_win = np.zeros(n_fft, dtype=np.float64)
    left = (n_fft - win_length) // 2
    full_win[left:left + win_length] = win
    if normalized:
        full_win = full_win / np.sqrt(np.sum(win ** 2))

    # Framing strategy.
    if n_fft % hop_length == 0:
        chunk_len = hop_length                 # fast path: in-kernel framing
        R = n_fft // hop_length
    else:
        chunk_len = n_fft                      # fallback: gather-built frames
        R = 1

    tm = 128 * max(1, min(4, pl.cdiv(n_frames, 128)))  # 128..512 frames per tile
    n_tiles = pl.cdiv(n_frames, tm)
    m_pad = n_tiles * tm

    if R > 1:
        c_pad = 8 * pl.cdiv(m_pad + R - 1, 8)
        need = c_pad * chunk_len
        wf = jnp.pad(wf, ((0, 0), (0, need - Tp)))
        chunks = wf.reshape(Bf, c_pad, chunk_len)
    else:
        # TODO(synk): strided in-kernel framing when hop does not divide n_fft.
        c_pad = m_pad
        need = (m_pad - 1) * hop_length + n_fft
        wf = jnp.pad(wf, ((0, 0), (0, max(0, need - Tp))))
        idx = (np.arange(m_pad)[:, None] * hop_length
               + np.arange(n_fft)[None, :])
        chunks = wf[:, idx]                            # (Bf, m_pad, n_fft)

    # Window-folded, transposed, onesided DFT matrix split into R hop slabs:
    #   WT[r, k, s]         =  w[n] * cos(2*pi*k*n/n_fft)   with n = r*chunk_len + s
    #   WT[r, f_pad + k, s] = -w[n] * sin(2*pi*k*n/n_fft)
    nn = np.arange(n_fft, dtype=np.float64)
    kk = np.arange(n_freq, dtype=np.float64)
    ang = 2.0 * np.pi * np.outer(kk, nn) / n_fft       # (n_freq, n_fft)
    wt_full = np.zeros((2 * f_pad, n_fft), dtype=np.float64)
    wt_full[:n_freq] = np.cos(ang) * full_win[None, :]
    wt_full[f_pad:f_pad + n_freq] = -np.sin(ang) * full_win[None, :]
    wt = jnp.asarray(
        wt_full.reshape(2 * f_pad, R, chunk_len).transpose(1, 0, 2),
        dtype=jnp.float32)                             # (R, 2*f_pad, chunk_len)

    kernel = functools.partial(_spec_kernel, tm=tm, R=R, f_pad=f_pad,
                               power=float(power))

    flops = 2 * Bf * n_tiles * tm * (2 * f_pad) * n_fft
    bytes_accessed = int(Bf * c_pad * chunk_len * 4
                         + R * 2 * f_pad * chunk_len * 4
                         + Bf * f_pad * m_pad * 4)

    # Rough VMEM estimate (lane-padded blocks, double-buffered streams).
    lane = lambda x: 128 * pl.cdiv(x, 128)
    vmem_est = (2 * c_pad * lane(chunk_len) * 4
                + R * 2 * f_pad * lane(chunk_len) * 4
                + 2 * f_pad * tm * 4) + (2 << 20)
    vmem_limit = None
    if vmem_est > 32 * 1024 * 1024:
        vmem_limit = int(min(vmem_est, 112 * 1024 * 1024))

    out = pl.pallas_call(
        kernel,
        out_shape=jax.ShapeDtypeStruct((Bf, f_pad, m_pad), jnp.float32),
        grid=(Bf, n_tiles),
        in_specs=[
            pl.BlockSpec((1, c_pad, chunk_len), lambda b, j: (b, 0, 0)),
            pl.BlockSpec((R, 2 * f_pad, chunk_len), lambda b, j: (0, 0, 0)),
        ],
        out_specs=pl.BlockSpec((1, f_pad, tm), lambda b, j: (b, 0, j)),
        compiler_params=pltpu.CompilerParams(
            dimension_semantics=("parallel", "parallel"),
            vmem_limit_bytes=vmem_limit),
        cost_estimate=pl.CostEstimate(flops=flops, transcendentals=0,
                                      bytes_accessed=bytes_accessed),
    )(chunks, wt)

    spec = out[:, :n_freq, :n_frames]
    return spec.reshape(batch_shape + (n_freq, n_frames))


def _reference_spectrogram(waveform, *, n_fft, hop_length):
    """Pure-JAX reference via rfft (center=True, reflect, hann, power=2)."""
    batch_shape = waveform.shape[:-1]
    wf = waveform.reshape(-1, waveform.shape[-1])
    pc = n_fft // 2
    wf = jnp.pad(wf, ((0, 0), (pc, pc)), mode="reflect")
    n_frames = 1 + (wf.shape[-1] - n_fft) // hop_length
    idx = (np.arange(n_frames)[:, None] * hop_length + np.arange(n_fft)[None, :])
    frames = wf[:, idx]
    n = np.arange(n_fft)
    window = jnp.asarray(
        (0.5 - 0.5 * np.cos(2 * np.pi * n / n_fft)).astype(np.float32))
    X = jnp.fft.rfft(frames * window[None, None, :], axis=-1)
    spec = jnp.abs(X) ** 2
    spec = jnp.transpose(spec, (0, 2, 1))
    return spec.reshape(batch_shape + spec.shape[-2:]).astype(jnp.float32)


if __name__ == "__main__":
    key = jax.random.PRNGKey(0)
    batch, channels, time = 2, 4, 256
    waveform = jax.random.normal(key, (batch, channels, time), dtype=jnp.float32)

    # Config 1: hop divides n_fft -> in-kernel framing fast path.
    n_fft, hop = 64, 16
    fn = jax.jit(functools.partial(spectrogram_pallas, n_fft=n_fft,
                                   hop_length=hop, power=2.0))
    out = fn(waveform)
    jax.block_until_ready(out)
    expected_shape = (batch, channels, n_fft // 2 + 1, 1 + time // hop)
    assert out.shape == expected_shape, (out.shape, expected_shape)
    ref = _reference_spectrogram(waveform, n_fft=n_fft, hop_length=hop)
    np.testing.assert_allclose(np.asarray(out), np.asarray(ref),
                               rtol=2e-3, atol=1e-2)

    # Config 2: hop does not divide n_fft -> gather fallback path.
    n_fft2, hop2 = 64, 24
    fn2 = jax.jit(functools.partial(spectrogram_pallas, n_fft=n_fft2,
                                    hop_length=hop2, power=2.0))
    out2 = fn2(waveform)
    jax.block_until_ready(out2)
    ref2 = _reference_spectrogram(waveform, n_fft=n_fft2, hop_length=hop2)
    assert out2.shape == ref2.shape, (out2.shape, ref2.shape)
    np.testing.assert_allclose(np.asarray(out2), np.asarray(ref2),
                               rtol=2e-3, atol=1e-2)

    print("KERNEL_OK")
</pallas_src>

<mosaic_0001>
module attributes {stable_mosaic.version = 11 : i64} {
  func.func @_spec_kernel(%arg0: i32, %arg1: i32, %arg2: memref<1x136x16xf32, #tpu.memory_space<vmem>>, %arg3: memref<4x80x16xf32, #tpu.memory_space<vmem>>, %arg4: memref<1x40x128xf32, #tpu.memory_space<vmem>>) attributes {dimension_semantics = [#tpu.dimension_semantics<parallel>, #tpu.dimension_semantics<parallel>], iteration_bounds = array<i64: 8, 1>, scalar_prefetch = 0 : i64, scratch_operands = 0 : i64, tpu.core_type = #tpu.core_type<tc>, window_params = [{transform_indices = @transform_0, window_bounds = array<i64: 1, 136, 16>}, {pipeline_mode = #tpu.pipeline_mode<synchronous>, transform_indices = @transform_1, window_bounds = array<i64: 4, 80, 16>}, {transform_indices = @transform_2, window_bounds = array<i64: 1, 40, 128>}]} {
    %c128_i32 = arith.constant 128 : i32
    %0 = arith.muli %arg1, %c128_i32 : i32
    %1 = tpu.assume_multiple %0, 128 : i32
    %cst = arith.constant 0.000000e+00 : f32
    %2 = vector.broadcast %cst : f32 to vector<80x128xf32>
    %c0_i32 = arith.constant 0 : i32
    %3 = arith.addi %1, %c0_i32 : i32
    %c0 = arith.constant 0 : index
    %4 = arith.index_cast %3 : i32 to index
    %c0_0 = arith.constant 0 : index
    %5 = vector.load %arg2[%c0, %4, %c0_0] : memref<1x136x16xf32, #tpu.memory_space<vmem>>, vector<1x128x16xf32>
    %6 = vector.shape_cast %5 : vector<1x128x16xf32> to vector<128x16xf32>
    %c0_1 = arith.constant 0 : index
    %c0_2 = arith.constant 0 : index
    %c0_3 = arith.constant 0 : index
    %7 = vector.load %arg3[%c0_1, %c0_2, %c0_3] : memref<4x80x16xf32, #tpu.memory_space<vmem>>, vector<1x80x16xf32>
    %8 = vector.shape_cast %7 : vector<1x80x16xf32> to vector<80x16xf32>
    %cst_4 = arith.constant dense<0.000000e+00> : vector<80x128xf32>
    %9 = tpu.matmul %8, %6, %cst_4 {dimension_numbers = #tpu.dot_dimension_numbers<[1], [1], [0], [0], [0, 0, 1, 0], [], []>} : vector<80x16xf32>, vector<128x16xf32>, vector<80x128xf32> -> vector<80x128xf32>
    %10 = arith.addf %2, %9 : vector<80x128xf32>
    %c1_i32 = arith.constant 1 : i32
    %11 = arith.addi %1, %c1_i32 : i32
    %c0_5 = arith.constant 0 : index
    %12 = arith.index_cast %11 : i32 to index
    %c0_6 = arith.constant 0 : index
    %13 = vector.load %arg2[%c0_5, %12, %c0_6] : memref<1x136x16xf32, #tpu.memory_space<vmem>>, vector<1x128x16xf32>
    %14 = vector.shape_cast %13 : vector<1x128x16xf32> to vector<128x16xf32>
    %c1 = arith.constant 1 : index
    %c0_7 = arith.constant 0 : index
    %c0_8 = arith.constant 0 : index
    %15 = vector.load %arg3[%c1, %c0_7, %c0_8] : memref<4x80x16xf32, #tpu.memory_space<vmem>>, vector<1x80x16xf32>
    %16 = vector.shape_cast %15 : vector<1x80x16xf32> to vector<80x16xf32>
    %cst_9 = arith.constant dense<0.000000e+00> : vector<80x128xf32>
    %17 = tpu.matmul %16, %14, %cst_9 {dimension_numbers = #tpu.dot_dimension_numbers<[1], [1], [0], [0], [0, 0, 1, 0], [], []>} : vector<80x16xf32>, vector<128x16xf32>, vector<80x128xf32> -> vector<80x128xf32>
    %18 = arith.addf %10, %17 : vector<80x128xf32>
    %c2_i32 = arith.constant 2 : i32
    %19 = arith.addi %1, %c2_i32 : i32
    %c0_10 = arith.constant 0 : index
    %20 = arith.index_cast %19 : i32 to index
    %c0_11 = arith.constant 0 : index
    %21 = vector.load %arg2[%c0_10, %20, %c0_11] : memref<1x136x16xf32, #tpu.memory_space<vmem>>, vector<1x128x16xf32>
    %22 = vector.shape_cast %21 : vector<1x128x16xf32> to vector<128x16xf32>
    %c2 = arith.constant 2 : index
    %c0_12 = arith.constant 0 : index
    %c0_13 = arith.constant 0 : index
    %23 = vector.load %arg3[%c2, %c0_12, %c0_13] : memref<4x80x16xf32, #tpu.memory_space<vmem>>, vector<1x80x16xf32>
    %24 = vector.shape_cast %23 : vector<1x80x16xf32> to vector<80x16xf32>
    %cst_14 = arith.constant dense<0.000000e+00> : vector<80x128xf32>
    %25 = tpu.matmul %24, %22, %cst_14 {dimension_numbers = #tpu.dot_dimension_numbers<[1], [1], [0], [0], [0, 0, 1, 0], [], []>} : vector<80x16xf32>, vector<128x16xf32>, vector<80x128xf32> -> vector<80x128xf32>
    %26 = arith.addf %18, %25 : vector<80x128xf32>
    %c3_i32 = arith.constant 3 : i32
    %27 = arith.addi %1, %c3_i32 : i32
    %c0_15 = arith.constant 0 : index
    %28 = arith.index_cast %27 : i32 to index
    %c0_16 = arith.constant 0 : index
    %29 = vector.load %arg2[%c0_15, %28, %c0_16] : memref<1x136x16xf32, #tpu.memory_space<vmem>>, vector<1x128x16xf32>
    %30 = vector.shape_cast %29 : vector<1x128x16xf32> to vector<128x16xf32>
    %c3 = arith.constant 3 : index
    %c0_17 = arith.constant 0 : index
    %c0_18 = arith.constant 0 : index
    %31 = vector.load %arg3[%c3, %c0_17, %c0_18] : memref<4x80x16xf32, #tpu.memory_space<vmem>>, vector<1x80x16xf32>
    %32 = vector.shape_cast %31 : vector<1x80x16xf32> to vector<80x16xf32>
    %cst_19 = arith.constant dense<0.000000e+00> : vector<80x128xf32>
    %33 = tpu.matmul %32, %30, %cst_19 {dimension_numbers = #tpu.dot_dimension_numbers<[1], [1], [0], [0], [0, 0, 1, 0], [], []>} : vector<80x16xf32>, vector<128x16xf32>, vector<80x128xf32> -> vector<80x128xf32>
    %34 = arith.addf %26, %33 : vector<80x128xf32>
    %35 = vector.extract_strided_slice %34 {offsets = [0, 0], sizes = [40, 128], strides = [1, 1]} : vector<80x128xf32> to vector<40x128xf32>
    %36 = vector.extract_strided_slice %34 {offsets = [40, 0], sizes = [40, 128], strides = [1, 1]} : vector<80x128xf32> to vector<40x128xf32>
    %37 = arith.mulf %35, %35 : vector<40x128xf32>
    %38 = arith.mulf %36, %36 : vector<40x128xf32>
    %39 = arith.addf %37, %38 : vector<40x128xf32>
    %c0_20 = arith.constant 0 : index
    %c0_21 = arith.constant 0 : index
    %c0_22 = arith.constant 0 : index
    %40 = vector.load %arg4[%c0_20, %c0_21, %c0_22] : memref<1x40x128xf32, #tpu.memory_space<vmem>>, vector<1x40x128xf32>
    %41 = vector.shape_cast %40 : vector<1x40x128xf32> to vector<40x128xf32>
    %42 = vector.shape_cast %39 : vector<40x128xf32> to vector<1x40x128xf32>
    tpu.vector_store %arg4[%c0_20, %c0_21, %c0_22], %42 {strides = array<i32>} : memref<1x40x128xf32, #tpu.memory_space<vmem>>, vector<1x40x128xf32>,
    return
  }
  func.func @transform_0(%arg0: i32, %arg1: i32) -> (i32, i32, i32) {
    %c0_i32 = arith.constant 0 : i32
    %c0_i32_0 = arith.constant 0 : i32
    %c0_i32_1 = arith.constant 0 : i32
    return %arg0, %c0_i32, %c0_i32_0 : i32, i32, i32
  }
  func.func @transform_1(%arg0: i32, %arg1: i32) -> (i32, i32, i32) {
    %c0_i32 = arith.constant 0 : i32
    %c0_i32_0 = arith.constant 0 : i32
    %c0_i32_1 = arith.constant 0 : i32
    %c0_i32_2 = arith.constant 0 : i32
    return %c0_i32, %c0_i32_0, %c0_i32_1 : i32, i32, i32
  }
  func.func @transform_2(%arg0: i32, %arg1: i32) -> (i32, i32, i32) {
    %c0_i32 = arith.constant 0 : i32
    %c0_i32_0 = arith.constant 0 : i32
    return %arg0, %c0_i32, %arg1 : i32, i32, i32
  }
}

</mosaic_0001>

<bundles_post_ra>
// kernel: spectrogram_pallas.1
= control target key start
LH: loop header
LB: loop body
LE: loop exit
PB: predicated region body
PF: predicated region fallthrough
CT: control target
= control target key end

     0   :  { %s1950_s9 = smov 0   ;;  %s1952_s10 = smov 0   ;;  %s2347_s0 = inlined_call_operand.vmem [shape: f32[8,136,16], index: 0, kind: input, shape index: {}]   ;;  %s2348_s1 = inlined_call_operand.vmem [shape: f32[4,80,16], index: 1, kind: input, shape index: {}]   ;;  %s2349_s2 = inlined_call_operand.vmem [shape: f32[8,40,128], index: 2, kind: output, shape index: {}]  }
   0x1   :  { %s1954_s11 = smov 0  }
   0x2 LB: > { %s24_s12 = sadd.s32 1, %s1929_s10  ;;  %p1184_p0 = scmp.ge.s32.totalorder %s1933_s11, 1  ;;  %s1933_s11 = sphi %s1954_s11, %s12_s11   ;;  %s1929_s10 = sphi %s1952_s10, %s2353_s10   ;;  %s1925_s9 = sphi %s1950_s9, %s2352_s9  }
   0x3   : > { %p26_p1 = scmp.ge.s32.totalorder %s24_s12, 8  ;;  %p126_p2 = scmp.lt.s32.totalorder %s1933_s11, 9 }
   0x5   : > { %s2355_s12 = smov (%p26_p1, %s24_s12), 0  ;;  %p127_p3 = pnand %p1184_p0, %p126_p2 }
   0x6   : > { %p151_p4 = scmp.lt.s32.totalorder (!%p127_p3), %s1925_s9, 7  ;;  %vm221_vm0 = vcmask (!%p127_p3), 130048   ;;  %v1203_v0 = vld [vmem:[%s2348_s1 + $0x50] sm:$0xff] (!%p127_p3)  ;;  %v1281_v1 = vld [vmem:[%s2348_s1 + $0xa0] sm:$0xff] (!%p127_p3)  ;;  %v1204_v61 = vld [vmem:[%s2348_s1 + $0x58] sm:$0xff] (!%p127_p3) }
   0x7   : > { %130 = sbr.rel (%p127_p3) target bundleno = 386 (0x182), region = 28  ;;  %1507 = vmatprep.mubr.msk.f32.mxu1 (!%p127_p3), %vm221_vm0, %v1203_v0  ;;  %1601 = vmatprep.mubr.msk.f32.mxu0 (!%p127_p3), %vm221_vm0, %v1281_v1  ;;  %vm1986_vm1 = vmpackc.low (!%p127_p3), %vm221_vm0, %vm221_vm0  ;;  %v1282_v62 = vld [vmem:[%s2348_s1 + $0xa8] sm:$0xff] (!%p127_p3)  ;;  %v1205_v1 = vld [vmem:[%s2348_s1 + $0x60] sm:$0xff] (!%p127_p3) }
   0x8   : > { %v185_v2 = vld [vmem:[%s2348_s1 + $0x18] sm:$0xff] (!%p127_p3) }
   0xe   : > { %s2357_s9 = smov (!%p151_p4, %s1925_s9), 7 }
   0xf   : > { %s1885_s17 = smul.u32 136, %s2357_s9 }
  0x10   : > { %s1886_s26 = smul.u32 40, %s2357_s9 }
  0x11   : > { %s1982_s20 = scalar_lea.vmem %s2347_s0, %s1885_s17 }
  0x12   : > { %v1187_v3 = vld [vmem:[%s1982_s20 + $0x1] sm:$0xff]  ;;  %v1188_v4 = vld [vmem:[%s1982_s20 + $0x9] sm:$0xff]  ;;  %v1189_v8 = vld [vmem:[%s1982_s20 + $0x11] sm:$0xff]  ;;  %s163_s29 = scalar_lea.vmem %s2349_s2, %s1886_s26 }
  0x13   : > { %v1265_v5 = vld [vmem:[%s1982_s20 + $0x2] sm:$0xff]  ;;  %v1663_v6 = vpack.c.bf16 %v1188_v4, %v1187_v3  ;;  %v1266_v7 = vld [vmem:[%s1982_s20 + $0xa] sm:$0xff]  ;;  %v1190_v9 = vld [vmem:[%s1982_s20 + $0x19] sm:$0xff] }
  0x14   : > { %v1759_v10 = vpack.c.bf16 %v1266_v7, %v1265_v5  ;;  %v1669_v11 = vpack.c.bf16 %v1190_v9, %v1189_v8  ;;  %v1267_v12 = vld [vmem:[%s1982_s20 + $0x12] sm:$0xff]  ;;  %v1268_v13 = vld [vmem:[%s1982_s20 + $0x1a] sm:$0xff]  ;;  %v1192_v16 = vld [vmem:[%s1982_s20 + $0x29] sm:$0xff] }
  0x15   : > { %1665 = vmatprep.subr.msk.bf16.mxu1 %vm1986_vm1, %v1663_v6  ;;  %v1765_v14 = vpack.c.bf16 %v1268_v13, %v1267_v12  ;;  %v1191_v15 = vld [vmem:[%s1982_s20 + $0x21] sm:$0xff]  ;;  %v1270_v18 = vld [vmem:[%s1982_s20 + $0x2a] sm:$0xff]  ;;  %v1194_v22 = vld [vmem:[%s1982_s20 + $0x39] sm:$0xff] }
  0x16   : > { %1761 = vmatprep.subr.msk.bf16.mxu0 %vm1986_vm1, %v1759_v10  ;;  %1668 = vmatpush3.bf16.xpose.msk.msra.mxu1 %vm1986_vm1, %v1663_v6  ;;  %v1269_v17 = vld [vmem:[%s1982_s20 + $0x22] sm:$0xff]  ;;  %v1675_v19 = vpack.c.bf16 %v1192_v16, %v1191_v15  ;;  %v1193_v21 = vld [vmem:[%s1982_s20 + $0x31] sm:$0xff]  ;;  %v1272_v24 = vld [vmem:[%s1982_s20 + $0x3a] sm:$0xff] }
  0x17   : > { %1764 = vmatpush3.bf16.xpose.msk.msra.mxu0 %vm1986_vm1, %v1759_v10  ;;  %1671 = vmatprep.subr.msk.bf16.mxu1 %vm1986_vm1, %v1669_v11  ;;  %v1771_v20 = vpack.c.bf16 %v1270_v18, %v1269_v17  ;;  %v1271_v23 = vld [vmem:[%s1982_s20 + $0x32] sm:$0xff]  ;;  %v1681_v25 = vpack.c.bf16 %v1194_v22, %v1193_v21  ;;  %v1195_v27 = vld [vmem:[%s1982_s20 + $0x41] sm:$0xff]  ;;  %v1196_v28 = vld [vmem:[%s1982_s20 + $0x49] sm:$0xff] }
  0x18   : > { %1767 = vmatprep.subr.msk.bf16.mxu0 %vm1986_vm1, %v1765_v14  ;;  %v1777_v26 = vpack.c.bf16 %v1272_v24, %v1271_v23  ;;  %v1273_v29 = vld [vmem:[%s1982_s20 + $0x42] sm:$0xff]  ;;  %v1274_v30 = vld [vmem:[%s1982_s20 + $0x4a] sm:$0xff]  ;;  %v1687_v31 = vpack.c.bf16 %v1196_v28, %v1195_v27  ;;  %v1198_v34 = vld [vmem:[%s1982_s20 + $0x59] sm:$0xff] }
  0x19   : > { %v1783_v32 = vpack.c.bf16 %v1274_v30, %v1273_v29  ;;  %v1197_v33 = vld [vmem:[%s1982_s20 + $0x51] sm:$0xff]  ;;  %v1276_v36 = vld [vmem:[%s1982_s20 + $0x5a] sm:$0xff]  ;;  %v1200_v40 = vld [vmem:[%s1982_s20 + $0x69] sm:$0xff] }
  0x1a   : > { %v1275_v35 = vld [vmem:[%s1982_s20 + $0x52] sm:$0xff]  ;;  %v1693_v37 = vpack.c.bf16 %v1198_v34, %v1197_v33  ;;  %v1199_v39 = vld [vmem:[%s1982_s20 + $0x61] sm:$0xff]  ;;  %v1278_v42 = vld [vmem:[%s1982_s20 + $0x6a] sm:$0xff] }
  0x1b   : > { %v1789_v38 = vpack.c.bf16 %v1276_v36, %v1275_v35  ;;  %v1277_v41 = vld [vmem:[%s1982_s20 + $0x62] sm:$0xff]  ;;  %v1699_v43 = vpack.c.bf16 %v1200_v40, %v1199_v39  ;;  %v1201_v45 = vld [vmem:[%s1982_s20 + $0x71] sm:$0xff]  ;;  %v1202_v46 = vld [vmem:[%s1982_s20 + $0x79] sm:$0xff] }
  0x1c   : > { %v1795_v44 = vpack.c.bf16 %v1278_v42, %v1277_v41  ;;  %v1279_v47 = vld [vmem:[%s1982_s20 + $0x72] sm:$0xff]  ;;  %v1280_v48 = vld [vmem:[%s1982_s20 + $0x7a] sm:$0xff]  ;;  %v1705_v49 = vpack.c.bf16 %v1202_v46, %v1201_v45  ;;  %v167_v52 = vld [vmem:[%s1982_s20 + $0x8] sm:$0xff] }
  0x1d   : > { %v1801_v50 = vpack.c.bf16 %v1280_v48, %v1279_v47  ;;  %v166_v51 = vld [vmem:[%s1982_s20] sm:$0xff]  ;;  %v1318_v54 = vld [vmem:[%s1982_s20 + $0xb] sm:$0xff]  ;;  %v169_v58 = vld [vmem:[%s1982_s20 + $0x18] sm:$0xff] }
  0x1e   : > { %1674 = vmatpush3.bf16.xpose.msk.msra.mxu1 %vm1986_vm1, %v1669_v11  ;;  %v1317_v53 = vld [vmem:[%s1982_s20 + $0x3] sm:$0xff]  ;;  %v1711_v55 = vpack.c.bf16 %v167_v52, %v166_v51  ;;  %v168_v57 = vld [vmem:[%s1982_s20 + $0x10] sm:$0xff]  ;;  %v1320_v60 = vld [vmem:[%s1982_s20 + $0x1b] sm:$0xff] }
  0x1f   : > { %1770 = vmatpush3.bf16.xpose.msk.msra.mxu0 %vm1986_vm1, %v1765_v14  ;;  %1677 = vmatprep.subr.msk.bf16.mxu1 %vm1986_vm1, %v1675_v19  ;;  %v1807_v56 = vpack.c.bf16 %v1318_v54, %v1317_v53  ;;  %v1319_v59 = vld [vmem:[%s1982_s20 + $0x13] sm:$0xff]  ;;  %v1717_v63 = vpack.c.bf16 %v169_v58, %v168_v57  ;;  %v1206_v4 = vld [vmem:[%s2348_s1 + $0x68] sm:$0xff]  ;;  %v170_v7 = vld [vmem:[%s1982_s20 + $0x20] sm:$0xff] }
  0x20   : > { %1773 = vmatprep.subr.msk.bf16.mxu0 %vm1986_vm1, %v1771_v20  ;;  %v1813_v0 = vpack.c.bf16 %v1320_v60, %v1319_v59  ;;  %v1283_v3 = vld [vmem:[%s2348_s1 + $0xb0] sm:$0xff]  ;;  %v1284_v5 = vld [vmem:[%s2348_s1 + $0xb8] sm:$0xff]  ;;  %v171_v8 = vld [vmem:[%s1982_s20 + $0x28] sm:$0xff] }
  0x21   : > { %v1207_v6 = vld [vmem:[%s2348_s1 + $0x70] sm:$0xff]  ;;  %v1285_v9 = vld [vmem:[%s2348_s1 + $0xc0] sm:$0xff]  ;;  %v1208_v12 = vld [vmem:[%s2348_s1 + $0x78] sm:$0xff]  ;;  %v1723_v13 = vpack.c.bf16 %v171_v8, %v170_v7 }
  0x22   : > { %v1321_v10 = vld [vmem:[%s1982_s20 + $0x23] sm:$0xff]  ;;  %v1322_v11 = vld [vmem:[%s1982_s20 + $0x2b] sm:$0xff]  ;;  %v173_v22 = vld [vmem:[%s1982_s20 + $0x38] sm:$0xff] }
  0x23   : > { %v1286_v14 = vld [vmem:[%s2348_s1 + $0xc8] sm:$0xff]  ;;  %v1819_v15 = vpack.c.bf16 %v1322_v11, %v1321_v10  ;;  %v1209_v16 = vld [vmem:[%s2348_s1 + $0x80] sm:$0xff]  ;;  %v1287_v17 = vld [vmem:[%s2348_s1 + $0xd0] sm:$0xff] }
  0x24   : > { %v1210_v18 = vld [vmem:[%s2348_s1 + $0x88] sm:$0xff]  ;;  %v172_v21 = vld [vmem:[%s1982_s20 + $0x30] sm:$0xff]  ;;  %v1289_v23 = vld [vmem:[%s2348_s1 + $0xe0] sm:$0xff] }
  0x25   : > { %v1323_v24 = vld [vmem:[%s1982_s20 + $0x33] sm:$0xff]  ;;  %v1729_v27 = vpack.c.bf16 %v173_v22, %v172_v21  ;;  %v1290_v28 = vld [vmem:[%s2348_s1 + $0xe8] sm:$0xff]  ;;  %v182_v30 = vld [vmem:[%s2348_s1] sm:$0xff] }
  0x26   : > { %1680 = vmatpush3.bf16.xpose.msk.msra.mxu1 %vm1986_vm1, %v1675_v19  ;;  %v1288_v19 = vld [vmem:[%s2348_s1 + $0xd8] sm:$0xff]  ;;  %v175_v33 = vld [vmem:[%s1982_s20 + $0x48] sm:$0xff]  ;;  %v184_v58 = vld [vmem:[%s2348_s1 + $0x10] sm:$0xff] }
  0x27   : > { %1776 = vmatpush3.bf16.xpose.msk.msra.mxu0 %vm1986_vm1, %v1771_v20  ;;  %1683 = vmatprep.subr.msk.bf16.mxu1 %vm1986_vm1, %v1681_v25  ;;  %v1211_v20 = vld [vmem:[%s2348_s1 + $0x90] sm:$0xff]  ;;  %v1325_v34 = vld [vmem:[%s1982_s20 + $0x43] sm:$0xff]  ;;  %v177_v39 = vld [vmem:[%s1982_s20 + $0x58] sm:$0xff] }
  0x28   : > { %1779 = vmatprep.subr.msk.bf16.mxu0 %vm1986_vm1, %v1777_v26  ;;  %v1326_v35 = vld [vmem:[%s1982_s20 + $0x4b] sm:$0xff]  ;;  %v1327_v40 = vld [vmem:[%s1982_s20 + $0x53] sm:$0xff]  ;;  %v1328_v41 = vld [vmem:[%s1982_s20 + $0x5b] sm:$0xff] }
  0x29   : > { %v179_v45 = vld [vmem:[%s1982_s20 + $0x68] sm:$0xff]  ;;  %v181_v51 = vld [vmem:[%s1982_s20 + $0x78] sm:$0xff]  ;;  %v1335_v59 = vld [vmem:[%s2348_s1 + $0x100] sm:$0xff] }
  0x2a   : > { %v1329_v46 = vld [vmem:[%s1982_s20 + $0x63] sm:$0xff]  ;;  %v1330_v47 = vld [vmem:[%s1982_s20 + $0x6b] sm:$0xff]  ;;  %v1331_v52 = vld [vmem:[%s1982_s20 + $0x73] sm:$0xff] }
  0x2b   : > { %v1332_v53 = vld [vmem:[%s1982_s20 + $0x7b] sm:$0xff]  ;;  %v1336_v60 = vld [vmem:[%s2348_s1 + $0x108] sm:$0xff]  ;;  %v1341_v7 = vld [vmem:[%s2348_s1 + $0x130] sm:$0xff] }
  0x2c   : > { %v1334_v57 = vld [vmem:[%s2348_s1 + $0xf8] sm:$0xff]  ;;  %v191_v8 = vld [vmem:[%s2348_s1 + $0x48] sm:$0xff] }
  0x2e   : > { %1686 = vmatpush3.bf16.xpose.msk.msra.mxu1 %vm1986_vm1, %v1681_v25  ;;  %v1324_v25 = vld [vmem:[%s1982_s20 + $0x3b] sm:$0xff] }
  0x2f   : > { %1782 = vmatpush3.bf16.xpose.msk.msra.mxu0 %vm1986_vm1, %v1777_v26  ;;  %1689 = vmatprep.subr.msk.bf16.mxu1 %vm1986_vm1, %v1687_v31  ;;  %v1212_v26 = vld [vmem:[%s2348_s1 + $0x98] sm:$0xff]  ;;  %v1825_v29 = vpack.c.bf16 %v1324_v25, %v1323_v24 }
  0x30   : > { %1785 = vmatprep.subr.msk.bf16.mxu0 %vm1986_vm1, %v1783_v32 }
  0x36   : > { %1692 = vmatpush3.bf16.xpose.msk.msra.mxu1 %vm1986_vm1, %v1687_v31  ;;  %v1333_v31 = vld [vmem:[%s2348_s1 + $0xf0] sm:$0xff] }
  0x37   : > { %1788 = vmatpush3.bf16.xpose.msk.msra.mxu0 %vm1986_vm1, %v1783_v32  ;;  %1695 = vmatprep.subr.msk.bf16.mxu1 %vm1986_vm1, %v1693_v37  ;;  %v174_v32 = vld [vmem:[%s1982_s20 + $0x40] sm:$0xff] }
  0x38   : > { %1791 = vmatprep.subr.msk.bf16.mxu0 %vm1986_vm1, %v1789_v38  ;;  %v1735_v36 = vpack.c.bf16 %v175_v33, %v174_v32 }
  0x3e   : > { %1698 = vmatpush3.bf16.xpose.msk.msra.mxu1 %vm1986_vm1, %v1693_v37  ;;  %v1831_v37 = vpack.c.bf16 %v1326_v35, %v1325_v34 }
  0x3f   : > { %1794 = vmatpush3.bf16.xpose.msk.msra.mxu0 %vm1986_vm1, %v1789_v38  ;;  %1701 = vmatprep.subr.msk.bf16.mxu1 %vm1986_vm1, %v1699_v43  ;;  %v176_v38 = vld [vmem:[%s1982_s20 + $0x50] sm:$0xff] }
  0x40   : > { %1797 = vmatprep.subr.msk.bf16.mxu0 %vm1986_vm1, %v1795_v44  ;;  %v1741_v42 = vpack.c.bf16 %v177_v39, %v176_v38 }
  0x46   : > { %1704 = vmatpush3.bf16.xpose.msk.msra.mxu1 %vm1986_vm1, %v1699_v43  ;;  %v1837_v43 = vpack.c.bf16 %v1328_v41, %v1327_v40 }
  0x47   : > { %1800 = vmatpush3.bf16.xpose.msk.msra.mxu0 %vm1986_vm1, %v1795_v44  ;;  %1707 = vmatprep.subr.msk.bf16.mxu1 %vm1986_vm1, %v1705_v49  ;;  %v178_v44 = vld [vmem:[%s1982_s20 + $0x60] sm:$0xff] }
  0x48   : > { %1803 = vmatprep.subr.msk.bf16.mxu0 %vm1986_vm1, %v1801_v50  ;;  %v1747_v48 = vpack.c.bf16 %v179_v45, %v178_v44 }
  0x4e   : > { %1710 = vmatpush3.bf16.xpose.msk.msra.mxu1 %vm1986_vm1, %v1705_v49  ;;  %v1843_v49 = vpack.c.bf16 %v1330_v47, %v1329_v46 }
  0x4f   : > { %1806 = vmatpush3.bf16.xpose.msk.msra.mxu0 %vm1986_vm1, %v1801_v50  ;;  %1713 = vmatprep.subr.msk.bf16.mxu1 %vm1986_vm1, %v1711_v55  ;;  %v180_v50 = vld [vmem:[%s1982_s20 + $0x70] sm:$0xff] }
  0x50   : > { %1809 = vmatprep.subr.msk.bf16.mxu0 %vm1986_vm1, %v1807_v56  ;;  %v1753_v54 = vpack.c.bf16 %v181_v51, %v180_v50 }
  0x55   : > { %1508 = vmatmul.mubr.msk.f32.vlgmr.msra.gmra.mrb[0].mxu1 %vm221_vm0, %v1204_v61  ;;  %v186_v61 = vld [vmem:[%s2348_s1 + $0x20] sm:$0xff] }
  0x56   : > { %1716 = vmatpush3.bf16.xpose.msk.msra.mxu1 %vm1986_vm1, %v1711_v55  ;;  %1602 = vmatmul.mubr.msk.f32.vlgmr.msra.gmra.mrb[0].mxu0 %vm221_vm0, %v1282_v62  ;;  %v1849_v55 = vpack.c.bf16 %v1332_v53, %v1331_v52  ;;  %v1337_v62 = vld [vmem:[%s2348_s1 + $0x110] sm:$0xff] }
  0x57   : > { %1812 = vmatpush3.bf16.xpose.msk.msra.mxu0 %vm1986_vm1, %v1807_v56  ;;  %1719 = vmatprep.subr.msk.bf16.mxu1 %vm1986_vm1, %v1717_v63  ;;  %v183_v56 = vld [vmem:[%s2348_s1 + $0x8] sm:$0xff] }
  0x58   : > { %1815 = vmatprep.subr.msk.bf16.mxu0 %vm1986_vm1, %v1813_v0  ;;  %1510 = vmatprep.mubr.msk.f32.mxu1 %vm221_vm0, %v1205_v1  ;;  %v188_v1 = vld [vmem:[%s2348_s1 + $0x30] sm:$0xff] }
  0x59   : > { %1604 = vmatprep.mubr.msk.f32.mxu0 %vm221_vm0, %v1283_v3  ;;  %1511 = vmatmul.mubr.msk.f32.gmra.mrb[2].mxu1 %vm221_vm0, %v1206_v4  ;;  %v1339_v3 = vld [vmem:[%s2348_s1 + $0x120] sm:$0xff]  ;;  %v189_v4 = vld [vmem:[%s2348_s1 + $0x38] sm:$0xff] }
  0x5a   : > { %1605 = vmatmul.mubr.msk.f32.gmra.mrb[2].mxu0 %vm221_vm0, %v1284_v5  ;;  %1513 = vmatprep.mubr.msk.f32.mxu1 %vm221_vm0, %v1207_v6  ;;  %v1340_v5 = vld [vmem:[%s2348_s1 + $0x128] sm:$0xff]  ;;  %v190_v6 = vld [vmem:[%s2348_s1 + $0x40] sm:$0xff] }
  0x5b   : > { %1607 = vmatprep.mubr.msk.f32.mxu0 %vm221_vm0, %v1285_v9  ;;  %v1342_v9 = vld [vmem:[%s2348_s1 + $0x138] sm:$0xff] }
  0x5d   : > { %1514 = vmatmul.mubr.msk.f32.gmra.mrb[4].mxu1 %vm221_vm0, %v1208_v12 }
  0x5e   : > { %1722 = vmatpush3.bf16.xpose.msk.msra.mxu1 %vm1986_vm1, %v1717_v63  ;;  %1608 = vmatmul.mubr.msk.f32.gmra.mrb[4].mxu0 %vm221_vm0, %v1286_v14  ;;  %v187_v63 = vld [vmem:[%s2348_s1 + $0x28] sm:$0xff] }
  0x5f   : > { %1818 = vmatpush3.bf16.xpose.msk.msra.mxu0 %vm1986_vm1, %v1813_v0  ;;  %1725 = vmatprep.subr.msk.bf16.mxu1 %vm1986_vm1, %v1723_v13  ;;  %v1338_v0 = vld [vmem:[%s2348_s1 + $0x118] sm:$0xff] }
  0x60   : > { %1821 = vmatprep.subr.msk.bf16.mxu0 %vm1986_vm1, %v1819_v15  ;;  %1516 = vmatprep.mubr.msk.f32.mxu1 %vm221_vm0, %v1209_v16 }
  0x61   : > { %1610 = vmatprep.mubr.msk.f32.mxu0 %vm221_vm0, %v1287_v17  ;;  %1517 = vmatmul.mubr.msk.f32.gmra.mrb[6].mxu1 %vm221_vm0, %v1210_v18 }
  0x62   : > { %1611 = vmatmul.mubr.msk.f32.gmra.mrb[6].mxu0 %vm221_vm0, %v1288_v19  ;;  %1519 = vmatprep.mubr.msk.f32.mxu1 %vm221_vm0, %v1211_v20 }
  0x63   : > { %1613 = vmatprep.mubr.msk.f32.mxu0 %vm221_vm0, %v1289_v23 }
  0x65   : > { %1520 = vmatmul.mubr.msk.f32.gmra.mrb[8].mxu1 %vm221_vm0, %v1212_v26 }
  0x66   : > { %1728 = vmatpush3.bf16.xpose.msk.msra.mxu1 %vm1986_vm1, %v1723_v13  ;;  %1614 = vmatmul.mubr.msk.f32.gmra.mrb[8].mxu0 %vm221_vm0, %v1290_v28 }
  0x67   : > { %1824 = vmatpush3.bf16.xpose.msk.msra.mxu0 %vm1986_vm1, %v1819_v15  ;;  %1731 = vmatprep.subr.msk.bf16.mxu1 %vm1986_vm1, %v1729_v27 }
  0x68   : > { %1827 = vmatprep.subr.msk.bf16.mxu0 %vm1986_vm1, %v1825_v29  ;;  %1554 = vmatprep.mubr.msk.f32.mxu1 %vm221_vm0, %v182_v30 }
  0x69   : > { %1648 = vmatprep.mubr.msk.f32.mxu0 %vm221_vm0, %v1333_v31 }
  0x6e   : > { %1734 = vmatpush3.bf16.xpose.msk.msra.mxu1 %vm1986_vm1, %v1729_v27 }
  0x6f   : > { %1830 = vmatpush3.bf16.xpose.msk.msra.mxu0 %vm1986_vm1, %v1825_v29  ;;  %1737 = vmatprep.subr.msk.bf16.mxu1 %vm1986_vm1, %v1735_v36 }
  0x70   : > { %1833 = vmatprep.subr.msk.bf16.mxu0 %vm1986_vm1, %v1831_v37 }
  0x76   : > { %1740 = vmatpush3.bf16.xpose.msk.msra.mxu1 %vm1986_vm1, %v1735_v36 }
  0x77   : > { %1836 = vmatpush3.bf16.xpose.msk.msra.mxu0 %vm1986_vm1, %v1831_v37  ;;  %1743 = vmatprep.subr.msk.bf16.mxu1 %vm1986_vm1, %v1741_v42 }
  0x78   : > { %1839 = vmatprep.subr.msk.bf16.mxu0 %vm1986_vm1, %v1837_v43 }
  0x7e   : > { %1746 = vmatpush3.bf16.xpose.msk.msra.mxu1 %vm1986_vm1, %v1741_v42 }
  0x7f   : > { %1842 = vmatpush3.bf16.xpose.msk.msra.mxu0 %vm1986_vm1, %v1837_v43  ;;  %1749 = vmatprep.subr.msk.bf16.mxu1 %vm1986_vm1, %v1747_v48 }
  0x80   : > { %1845 = vmatprep.subr.msk.bf16.mxu0 %vm1986_vm1, %v1843_v49 }
  0x86   : > { %1752 = vmatpush3.bf16.xpose.msk.msra.mxu1 %vm1986_vm1, %v1747_v48 }
  0x87   : > { %1848 = vmatpush3.bf16.xpose.msk.msra.mxu0 %vm1986_vm1, %v1843_v49  ;;  %1755 = vmatprep.subr.msk.bf16.mxu1 %vm1986_vm1, %v1753_v54 }
  0x88   : > { %1851 = vmatprep.subr.msk.bf16.mxu0 %vm1986_vm1, %v1849_v55 }
  0x8e   : > { %1758 = vmatpush3.bf16.xpose.msk.msra.mxu1 %vm1986_vm1, %v1753_v54 }
  0x8f   : > { %1854 = vmatpush3.bf16.xpose.msk.msra.mxu0 %vm1986_vm1, %v1849_v55 }
  0x95   : > { %1555 = vmatmul.mubr.msk.f32.vlgmr.msra.gmra.mrb[0].mxu1 %vm221_vm0, %v183_v56 }
  0x96   : > { %1649 = vmatmul.mubr.msk.f32.vlgmr.msra.gmra.mrb[0].mxu0 %vm221_vm0, %v1334_v57  ;;  %1557 = vmatprep.mubr.msk.f32.mxu1 %vm221_vm0, %v184_v58 }
  0x97   : > { %1651 = vmatprep.mubr.msk.f32.mxu0 %vm221_vm0, %v1335_v59 }
  0x99   : > { %1558 = vmatmul.mubr.msk.f32.gmra.mrb[2].mxu1 %vm221_vm0, %v185_v2 }
  0x9a   : > { %1652 = vmatmul.mubr.msk.f32.gmra.mrb[2].mxu0 %vm221_vm0, %v1336_v60  ;;  %1560 = vmatprep.mubr.msk.f32.mxu1 %vm221_vm0, %v186_v61 }
  0x9b   : > { %1654 = vmatprep.mubr.msk.f32.mxu0 %vm221_vm0, %v1337_v62 }
  0x9d   : > { %1561 = vmatmul.mubr.msk.f32.gmra.mrb[4].mxu1 %vm221_vm0, %v187_v63 }
  0x9e   : > { %1655 = vmatmul.mubr.msk.f32.gmra.mrb[4].mxu0 %vm221_vm0, %v1338_v0  ;;  %1563 = vmatprep.mubr.msk.f32.mxu1 %vm221_vm0, %v188_v1 }
  0x9f   : > { %1657 = vmatprep.mubr.msk.f32.mxu0 %vm221_vm0, %v1339_v3 }
  0xa1   : > { %1564 = vmatmul.mubr.msk.f32.gmra.mrb[6].mxu1 %vm221_vm0, %v189_v4 }
  0xa2   : > { %1658 = vmatmul.mubr.msk.f32.gmra.mrb[6].mxu0 %vm221_vm0, %v1340_v5  ;;  %1566 = vmatprep.mubr.msk.f32.mxu1 %vm221_vm0, %v190_v6 }
  0xa3   : > { %1660 = vmatprep.mubr.msk.f32.mxu0 %vm221_vm0, %v1341_v7 }
  0xa5   : > { %1567 = vmatmul.mubr.msk.f32.gmra.mrb[8].mxu1 %vm221_vm0, %v191_v8 }
  0xa6   : > { %1661 = vmatmul.mubr.msk.f32.gmra.mrb[8].mxu0 %vm221_vm0, %v1342_v9 }
 0x168   : > { %v1556_v10 = vpop.f32.mrb[0].mxu1 }
 0x169   : > { %v1650_v11 = vpop.f32.mrb[0].mxu0  ;;  %v559_v12 = vpop.f32.mrb[1].mxu1 }
 0x16a   : > { %v1855_v13 = vadd.f32 %v1650_v11, %v1556_v10  ;;  %v1013_v14 = vpop.f32.mrb[1].mxu0 }
 0x16b   : > { %v1856_v15 = vadd.f32 %v1013_v14, %v559_v12 }
 0x16c   : > { %v1559_v16 = vpop.f32.mrb[2].mxu1  ;;  %v1073_v40 = vmul.f32 %v1855_v13, %v1855_v13 }
 0x16d   : > { %v1653_v17 = vpop.f32.mrb[2].mxu0  ;;  %v569_v18 = vpop.f32.mrb[3].mxu1  ;;  %v1072_v28 = vmul.f32 %v1856_v15, %v1856_v15 }
 0x16e   : > { %v1857_v19 = vadd.f32 %v1653_v17, %v1559_v16  ;;  %v1023_v20 = vpop.f32.mrb[3].mxu0 }
 0x16f   : > { %v1858_v21 = vadd.f32 %v1023_v20, %v569_v18 }
 0x170   : > { %v1562_v22 = vpop.f32.mrb[4].mxu1  ;;  %v1075_v51 = vmul.f32 %v1857_v19, %v1857_v19 }
 0x171   : > { %v1656_v23 = vpop.f32.mrb[4].mxu0  ;;  %v579_v24 = vpop.f32.mrb[5].mxu1  ;;  %v1074_v37 = vmul.f32 %v1858_v21, %v1858_v21 }
 0x172   : > { %v1859_v25 = vadd.f32 %v1656_v23, %v1562_v22  ;;  %v1033_v26 = vpop.f32.mrb[5].mxu0 }
 0x173   : > { %v1860_v27 = vadd.f32 %v1033_v26, %v579_v24 }
 0x174   : > { %v1077_v29 = vmul.f32 %v1859_v25, %v1859_v25  ;;  %v1565_v30 = vpop.f32.mrb[6].mxu1 }
 0x175   : > { %v1659_v31 = vpop.f32.mrb[6].mxu0  ;;  %v589_v32 = vpop.f32.mrb[7].mxu1  ;;  %v1076_v49 = vmul.f32 %v1860_v27, %v1860_v27 }
 0x176   : > { %v1082_v33 = vadd.f32 %v1077_v29, %v1072_v28  ;;  %v1861_v34 = vadd.f32 %v1659_v31, %v1565_v30  ;;  %v1043_v35 = vpop.f32.mrb[7].mxu0 }
 0x177   : > { %v1862_v36 = vadd.f32 %v1043_v35, %v589_v32 }
 0x178   : > { %1087 = vst [vmem:[%s163_s29] sm:$0xff] %v1082_v33  ;;  %v1079_v38 = vmul.f32 %v1861_v34, %v1861_v34  ;;  %v1568_v39 = vpop.f32.mrb[8].mxu1 }
 0x179   : > { %v1078_v41 = vmul.f32 %v1862_v36, %v1862_v36  ;;  %v1662_v42 = vpop.f32.mrb[8].mxu0  ;;  %v599_v43 = vpop.f32.mrb[9].mxu1 }
 0x17a   : > { %v1084_v44 = vadd.f32 %v1079_v38, %v1074_v37  ;;  %v1863_v45 = vadd.f32 %v1662_v42, %v1568_v39  ;;  %v1053_v46 = vpop.f32.mrb[9].mxu0 }
 0x17b   : > { %v1083_v47 = vadd.f32 %v1078_v41, %v1073_v40  ;;  %v1864_v48 = vadd.f32 %v1053_v46, %v599_v43 }
 0x17c   : > { %1089 = vst [vmem:[%s163_s29 + $0x10] sm:$0xff] %v1084_v44  ;;  %v1081_v50 = vmul.f32 %v1863_v45, %v1863_v45 }
 0x17d   : > { %1088 = vst [vmem:[%s163_s29 + $0x8] sm:$0xff] %v1083_v47  ;;  %v1080_v52 = vmul.f32 %v1864_v48, %v1864_v48 }
 0x17e   : > { %v1086_v53 = vadd.f32 %v1081_v50, %v1076_v49 }
 0x17f   : > { %v1085_v54 = vadd.f32 %v1080_v52, %v1075_v51 }
 0x180   : > { %1091 = vst [vmem:[%s163_s29 + $0x20] sm:$0xff] %v1086_v53 }
 0x181   : > { %1090 = vst [vmem:[%s163_s29 + $0x18] sm:$0xff] %v1085_v54 }
 0x182 PF: > { %s12_s11 = sadd.s32 1, %s1933_s11   ;;  %s2352_s9 = smov %s1929_s10 }
 0x183   : > { %p9_p5 = scmp.ge.s32.totalorder %s12_s11, 10   ;;  %s2353_s10 = smov %s2355_s12 }
 0x185   :  { %11 = sbr.rel (!%p9_p5) target bundleno = 2 (0x2), region = 65 }

</bundles_post_ra>
